<compile_context>
chip_gen: v6e
topology: v6e:2x2x1
jax: 0.10.0
libtpu: 0.0.40
codegen_flags: <defaults>
</compile_context>

<pallas_src>
import functools

import jax
import jax.numpy as jnp
from jax.experimental import pallas as pl
from jax.experimental.pallas import tpu as pltpu


MAX_TILE_HW = 1024  # lanes per block; multiple of 128, sized well under VMEM.


# ----------------------------------------------------------------------------
# Pallas kernel: one tap-folded matmul + add-shift (+ ReLU) per (batch, tile).
# ----------------------------------------------------------------------------
def _conv_affine_relu_kernel(x_ref, w_ref, shift_ref, o_ref, *, apply_relu):
    # x_ref:     (1, 9*Cin, T)  folded im2col taps, bf16, HW tile in lanes
    # w_ref:     (Cout, 9*Cin)  BN-scale-folded conv weight, bf16
    # shift_ref: (Cout, 1)      folded BN shift (or conv bias), f32
    # o_ref:     (1, Cout, T)   f32
    y = jnp.dot(w_ref[...], x_ref[0], preferred_element_type=jnp.float32)
    y = y + shift_ref[...]
    if apply_relu:
        y = jnp.maximum(y, 0.0)
    o_ref[0] = y


# ----------------------------------------------------------------------------
# Glue: im2col (tap-major / channel-minor K order) + pallas_call wrapper.
# ----------------------------------------------------------------------------
def _im2col_nchw(x, stride):
    """x: (N, C, H, W) -> (N, 9*C, Ho*Wo) for a 3x3/pad-1 conv."""
    n, c, h, w = x.shape
    xp = jnp.pad(x, ((0, 0), (0, 0), (1, 1), (1, 1)))
    ho = (h + 2 - 3) // stride + 1
    wo = (w + 2 - 3) // stride + 1
    taps = []
    for dy in range(3):
        for dx in range(3):
            t = xp[:, :, dy:dy + stride * (ho - 1) + 1:stride,
                         dx:dx + stride * (wo - 1) + 1:stride]
            taps.append(t.reshape(n, c, ho * wo))
    # K index = (dy*3 + dx) * C + c  — matches w.reshape(9*Cin, Cout).
    return jnp.concatenate(taps, axis=1), ho, wo


def _pick_tile(hw):
    if hw % 128 == 0:
        tile = min(hw, MAX_TILE_HW)
        while hw % tile != 0:
            tile -= 128
        return tile
    return hw  # tiny / odd extents: single full-width block


def conv3x3(x, w, scale, shift, *, stride, relu):
    """Fused conv3x3(pad=1) + per-channel affine + optional ReLU.

    x: (N, Cin, H, W) NCHW, w: (3, 3, Cin, Cout), scale/shift: (Cout,).
    Returns (N, Cout, Ho, Wo) in f32.
    """
    n, cin, _, _ = x.shape
    cout = w.shape[-1]
    xt, ho, wo = _im2col_nchw(x, stride)                 # (n, K, hw)
    hw = ho * wo
    k = 9 * cin
    tile = _pick_tile(hw)

    # Fold BN scale into the weight; (3,3,Cin,Cout) -> (Cout, 9*Cin), bf16.
    wf = (w.reshape(k, cout).astype(jnp.float32) * scale[None, :]).T
    wf = wf.astype(jnp.bfloat16)
    sh = shift.reshape(cout, 1).astype(jnp.float32)

    out = pl.pallas_call(
        functools.partial(_conv_affine_relu_kernel, apply_relu=relu),
        grid=(n, hw // tile),
        in_specs=[
            pl.BlockSpec((1, k, tile), lambda b, t: (b, 0, t)),
            pl.BlockSpec((cout, k), lambda b, t: (0, 0)),
            pl.BlockSpec((cout, 1), lambda b, t: (0, 0)),
        ],
        out_specs=pl.BlockSpec((1, cout, tile), lambda b, t: (b, 0, t)),
        out_shape=jax.ShapeDtypeStruct((n, cout, hw), jnp.float32),
        compiler_params=pltpu.CompilerParams(
            dimension_semantics=("parallel", "parallel"),
            vmem_limit_bytes=32 * 1024 * 1024),
    )(xt.astype(jnp.bfloat16), wf, sh)
    return out.reshape(n, cout, ho, wo)


# ----------------------------------------------------------------------------
# Deterministic parameter construction (synthetic, matches module shapes)
# ----------------------------------------------------------------------------
def _conv_weight(key, cin, cout):
    fan_in = 3 * 3 * cin
    return jax.random.normal(key, (3, 3, cin, cout), jnp.float32) * (2.0 / fan_in) ** 0.5


def _bn_folded(key, c):
    kg, kb = jax.random.split(key)
    gamma = 1.0 + 0.1 * jax.random.normal(kg, (c,), jnp.float32)
    beta = 0.1 * jax.random.normal(kb, (c,), jnp.float32)
    running_mean = jnp.zeros((c,), jnp.float32)
    running_var = jnp.ones((c,), jnp.float32)
    scale = gamma / jnp.sqrt(running_var + 1e-5)
    shift = beta - running_mean * scale
    return scale, shift


def init_params(key, init_channels, levels, block_size):
    params = {}
    k = iter(jax.random.split(key, 64))

    # down_network[0]: Conv2d(3, C0, 3, 1, 1)  (bias, no BN, no ReLU)
    c0 = init_channels
    params["stem"] = dict(
        w=_conv_weight(next(k), 3, c0),
        scale=jnp.ones((c0,), jnp.float32),
        shift=0.1 * jax.random.normal(next(k), (c0,), jnp.float32),  # conv bias
    )

    # down_network[1]: NConv(C0, C0, ks=3, stride=2, bn=True, bias=False, relu=True, n=1)
    s, b = _bn_folded(next(k), c0)
    params["nconv0"] = [dict(w=_conv_weight(next(k), c0, c0), scale=s, shift=b,
                             stride=2)]

    # down_network[2..]: Down(in, out, n=block_size)
    params["down"] = []
    for lvl in range(levels):
        cin = (2 ** lvl) * init_channels
        cout = (2 ** (lvl + 1)) * init_channels
        blocks = []
        for j in range(block_size):
            ci = cin if j == 0 else cout
            s, b = _bn_folded(next(k), cout)
            blocks.append(dict(w=_conv_weight(next(k), ci, cout), scale=s,
                               shift=b, stride=2 if j == 0 else 1))
        params["down"].append(blocks)

    # Up(12, 8, n=block_size): upsample + concat -> NConv(12, 8, n)
    up_in, up_out = 12, 8
    blocks = []
    for j in range(block_size):
        ci = up_in if j == 0 else up_out
        s, b = _bn_folded(next(k), up_out)
        blocks.append(dict(w=_conv_weight(next(k), ci, up_out), scale=s,
                           shift=b, stride=1))
    params["up"] = blocks
    return params


# ----------------------------------------------------------------------------
# FeatureNetwork.forward (NCHW throughout, like PyTorch)
# ----------------------------------------------------------------------------
def feature_network_forward(x_nchw, params):
    outs = []
    p = params["stem"]
    outs.append(conv3x3(x_nchw, p["w"], p["scale"], p["shift"],
                        stride=1, relu=False))

    for p in params["nconv0"]:
        outs.append(conv3x3(outs[-1], p["w"], p["scale"], p["shift"],
                            stride=p["stride"], relu=True))

    for blocks in params["down"]:
        y = outs[-1]
        for p in blocks:
            y = conv3x3(y, p["w"], p["scale"], p["shift"],
                        stride=p["stride"], relu=True)
        outs.append(y)

    # Up(out[-1], out[-2]): nearest 2x upsample, concat with skip, then NConv.
    x1, x2 = outs[-1], outs[-2]
    x1_up = jnp.repeat(jnp.repeat(x1, 2, axis=2), 2, axis=3)
    # TODO(synk): concat order [skip, upsampled] assumed; PyTorch Up variants differ.
    y = jnp.concatenate([x2, x1_up], axis=1)              # (N, 12, H/2, W/2)
    for p in params["up"]:
        y = conv3x3(y, p["w"], p["scale"], p["shift"], stride=1, relu=True)

    return y  # already NCHW


if __name__ == "__main__":
    INIT_CHANNELS, LEVELS, BLOCK_SIZE = 4, 1, 2   # Up(12, 8) => C0=4, levels=1
    N, H, W = 2, 16, 16

    key = jax.random.PRNGKey(0)
    kx, kp = jax.random.split(key)
    params = init_params(kp, INIT_CHANNELS, LEVELS, BLOCK_SIZE)
    x = jax.random.normal(kx, (N, 3, H, W), jnp.float32)  # NCHW like PyTorch

    y = feature_network_forward(x, params)
    jax.block_until_ready(y)
    assert y.shape == (N, 8, H // 2, W // 2), y.shape
    print("KERNEL_OK")
</pallas_src>

<mosaic_0001>
module attributes {stable_mosaic.version = 11 : i64} {
  func.func @_conv_affine_relu_kernel(%arg0: i32, %arg1: i32, %arg2: memref<1x27x256xbf16, #tpu.memory_space<vmem>>, %arg3: memref<4x27xbf16, #tpu.memory_space<vmem>>, %arg4: memref<4x1xf32, #tpu.memory_space<vmem>>, %arg5: memref<1x4x256xf32, #tpu.memory_space<vmem>>) attributes {dimension_semantics = [#tpu.dimension_semantics<parallel>, #tpu.dimension_semantics<parallel>], iteration_bounds = array<i64: 2, 1>, scalar_prefetch = 0 : i64, scratch_operands = 0 : i64, tpu.core_type = #tpu.core_type<tc>, window_params = [{transform_indices = @transform_0, window_bounds = array<i64: 1, 27, 256>}, {pipeline_mode = #tpu.pipeline_mode<synchronous>, transform_indices = @transform_1, window_bounds = array<i64: 4, 27>}, {pipeline_mode = #tpu.pipeline_mode<synchronous>, transform_indices = @transform_2, window_bounds = array<i64: 4, 1>}, {transform_indices = @transform_3, window_bounds = array<i64: 1, 4, 256>}]} {
    %c0 = arith.constant 0 : index
    %c0_0 = arith.constant 0 : index
    %0 = vector.load %arg3[%c0, %c0_0] : memref<4x27xbf16, #tpu.memory_space<vmem>>, vector<4x27xbf16>
    %c0_1 = arith.constant 0 : index
    %c0_2 = arith.constant 0 : index
    %c0_3 = arith.constant 0 : index
    %1 = vector.load %arg2[%c0_1, %c0_2, %c0_3] : memref<1x27x256xbf16, #tpu.memory_space<vmem>>, vector<1x27x256xbf16>
    %2 = vector.shape_cast %1 : vector<1x27x256xbf16> to vector<27x256xbf16>
    %cst = arith.constant dense<0.000000e+00> : vector<4x256xf32>
    %3 = tpu.matmul %0, %2, %cst {dimension_numbers = #tpu.dot_dimension_numbers<[1], [0], [0], [1], [0, 0, 1, 1], [], []>} : vector<4x27xbf16>, vector<27x256xbf16>, vector<4x256xf32> -> vector<4x256xf32>
    %c0_4 = arith.constant 0 : index
    %c0_5 = arith.constant 0 : index
    %4 = vector.load %arg4[%c0_4, %c0_5] : memref<4x1xf32, #tpu.memory_space<vmem>>, vector<4x1xf32>
    %5 = vector.broadcast %4 : vector<4x1xf32> to vector<4x256xf32>
    %6 = arith.addf %3, %5 : vector<4x256xf32>
    %c0_6 = arith.constant 0 : index
    %c0_7 = arith.constant 0 : index
    %c0_8 = arith.constant 0 : index
    %7 = vector.load %arg5[%c0_6, %c0_7, %c0_8] : memref<1x4x256xf32, #tpu.memory_space<vmem>>, vector<1x4x256xf32>
    %8 = vector.shape_cast %7 : vector<1x4x256xf32> to vector<4x256xf32>
    %9 = vector.shape_cast %6 : vector<4x256xf32> to vector<1x4x256xf32>
    tpu.vector_store %arg5[%c0_6, %c0_7, %c0_8], %9 {strides = array<i32>} : memref<1x4x256xf32, #tpu.memory_space<vmem>>, vector<1x4x256xf32>,
    return
  }
  func.func @transform_0(%arg0: i32, %arg1: i32) -> (i32, i32, i32) {
    %c0_i32 = arith.constant 0 : i32
    %c0_i32_0 = arith.constant 0 : i32
    return %arg0, %c0_i32, %arg1 : i32, i32, i32
  }
  func.func @transform_1(%arg0: i32, %arg1: i32) -> (i32, i32) {
    %c0_i32 = arith.constant 0 : i32
    %c0_i32_0 = arith.constant 0 : i32
    %c0_i32_1 = arith.constant 0 : i32
    return %c0_i32, %c0_i32_0 : i32, i32
  }
  func.func @transform_2(%arg0: i32, %arg1: i32) -> (i32, i32) {
    %c0_i32 = arith.constant 0 : i32
    %c0_i32_0 = arith.constant 0 : i32
    %c0_i32_1 = arith.constant 0 : i32
    return %c0_i32, %c0_i32_0 : i32, i32
  }
  func.func @transform_3(%arg0: i32, %arg1: i32) -> (i32, i32, i32) {
    %c0_i32 = arith.constant 0 : i32
    %c0_i32_0 = arith.constant 0 : i32
    return %arg0, %c0_i32, %arg1 : i32, i32, i32
  }
}

</mosaic_0001>

<bundles_post_ra>
// kernel: tpu_custom_call.1
= control target key start
LH: loop header
LB: loop body
LE: loop exit
PB: predicated region body
PF: predicated region fallthrough
CT: control target
= control target key end

     0   :  { %8 = vsyncpa [#allocation3], 0  ;;  %s679_s0 = inlined_call_operand.vmem [shape: bf16[2,27,256], index: 0, kind: input, shape index: {}]   ;;  %s680_s1 = inlined_call_operand.vmem [shape: bf16[4,27], index: 1, kind: input, shape index: {}]   ;;  %s681_s2 = inlined_call_operand.vmem [shape: f32[4,1], index: 2, kind: input, shape index: {}]   ;;  %s682_s3 = inlined_call_operand.hbm [shape: f32[2,4,256], index: 3, kind: output, shape index: {}]  }
   0x1   :  { %10 = vsyncpa [#allocation3 + $0x1], 0  ;;  %s568_s12 = smov 0   ;;  %s570_s13 = smov 0  }
   0x2   :  { %s572_s14 = smov 0   ;;  %s574_s15 = smov 0  }
   0x3   :  { %s576_s16 = smov 0   ;;  %s578_s17 = smov 0  }
   0x4 LB: > { %s383_s18 = sadd.s32 4294967295, %s543_s17   ;;  %s384_s19 = sadd.s32 4294967294, %s543_s17   ;;  %s543_s17 = sphi %s578_s17, %s16_s17   ;;  %s539_s16 = sphi %s576_s16, %s689_s16   ;;  %s535_s15 = sphi %s574_s15, %s688_s15   ;;  %s531_s14 = sphi %s572_s14, %s687_s14   ;;  %s527_s13 = sphi %s570_s13, %s686_s13   ;;  %s523_s12 = sphi %s568_s12, %s685_s12  }
   0x5   : > { %s28_s20 = sadd.s32 1, %s539_s16  ;;  %s107_s21 = sadd.s32 1, %s531_s14 }
   0x6   : > { %p30_p0 = scmp.ge.s32.totalorder %s28_s20, 2  ;;  %p117_p1 = scmp.ne.s32.totalorder %s531_s14, %s527_s13 }
   0x7   : > { %p118_p2 = scmp.eq.s32.totalorder %s383_s18, 1  ;;  %p123_p3 = scmp.ne.s32.totalorder %s527_s13, %s523_s12 }
   0x8   : > { %s691_s20 = smov (%p30_p0, %s28_s20), 0  ;;  %p124_p5 = scmp.eq.s32.totalorder %s384_s19, 1 }
   0x9   : > { %p608_p4 = por %p118_p2, %p117_p1  ;;  %s102_s23 = ssub.s32 %s539_s16, %s691_s20 }
   0xa   : > { %p387_p6 = scmp.ge.s32.totalorder %s543_s17, 1  ;;  %p105_p7 = scmp.eq.s32.totalorder %s102_s23, 0 }
   0xb   : > { %p615_p8 = por %p124_p5, %p123_p3  ;;  %p161_p9 = scmp.lt.s32.totalorder %s543_s17, 3 }
   0xc   : > { %s621_s25 = scalar_select %p105_p7, %s531_s14, %s107_s21  }
   0xd   : > { %p162_p10 = pnand %p387_p6, %p161_p9 }
   0xe   : > { %p190_p11 = scmp.lt.s32.totalorder (!%p162_p10), %s535_s15, 1  ;;  %s186_s8 = sand.u32 (!%p162_p10), 1, %s527_s13  }
   0xf   : > { %165 = sbr.rel (%p162_p10) target bundleno = 247 (0xf7), region = 32  ;;  %s388_s9 = sshll.u32 (!%p162_p10), %s186_s8, 3 }
  0x10   : > { %s402_s10 = sshll.u32 (!%p162_p10), %s535_s15, 7  ;;  %s188_s11 = scalar_lea.vmem (!%p162_p10), [#allocation2], %s388_s9 }
  0x11   : > { %s307_s18 = sshll.u32 (!%p162_p10), %s188_s11, 4  ;;  %s639_s23 = scalar_lea.hbm (!%p162_p10), %s682_s3, %s402_s10  ;;  %s308_s18 = int_to_ptr.vmem [resolvable:$true] %s307_s18 }
  0x12   : > { %s291_s26 = scalar_lea.sflag (!%p162_p10), [#allocation3], %s186_s8  ;;  %s467_s27 = scalar_lea.vmem (!%p162_p10), %s308_s18, 128 }
  0x13   : > { %p468_p12 = scmp.ne.s32.totalorder (!%p162_p10), %s308_s18, %s467_s27 }
  0x14   : > { %vm234_vm0 = vcmask 1044480   ;;  %v545_v0 = vmov 0   ;;  %v206_v1 = vld [vmem:[%s681_s2] sm:$0xf]  ;;  %s191_s28 = scalar_select %p190_p11, %s535_s15, 1  ;;  %vm235_vm1 = vcmask 1045504  }
  0x15   : > { %276 = vmatprep.mubr.bf16.mxu0 %v545_v0  ;;  %460 = vset.pattern.permute.xlu0 %v545_v0  ;;  %v546_v2 = vmov 65535   ;;  %v201_v11 = vld [vmem:[%s680_s1] sm:$0x3]  ;;  %vm230_vm2 = vcmask 220160   ;;  %p469_p13 = pnand %p468_p12, %p608_p4  ;;  %s547_s15 = smov [#allocation2]  }
  0x16   : > { %v236_v3 = vsel %vm234_vm0, 4294967295, %v546_v2  ;;  %209 = vperm.xlu0 %460, %v206_v1   ;;  %s401_s29 = sshll.u32 %s191_s28, 5  ;;  %s471_s28 = sshll.u32 %s547_s15, 4  ;;  %s472_s28 = int_to_ptr.vmem [resolvable:$false] %s471_s28 }
  0x17   : > { %s197_s5 = scalar_lea.vmem %s679_s0, %s401_s29  ;;  %v237_v4 = vsel %vm235_vm1, %v236_v3, 0  ;;  %p470_p0 = pneg %p469_p13 }
  0x18   : > { %v461_v5 = vld [vmem:[%s197_s5 + $0x14] ss:$8 sps:$4 sm:$0x3f]   ;;  %v463_v6 = vld [vmem:[%s197_s5 + $0x10] ss:$8 sps:$4 sm:$0x3f]   ;;  %p474_p1 = scmp.lt.s32.totalorder %s308_s18, %s472_s28 }
  0x19   : > { %v242_v7 = vand.u32 %v461_v5, %v237_v4  ;;  %v464_v8 = vld [vmem:[%s197_s5 + $0x4] ss:$8 sps:$4 sm:$0xff]   ;;  %v239_v9 = vand.u32 %v463_v6, %v237_v4  ;;  %v466_v10 = vld [vmem:[%s197_s5] ss:$8 sps:$4 sm:$0xff]   ;;  %s473_s29 = scalar_lea.vmem %s472_s28, 256 }
  0x1a   : > { %p475_p2 = scmp.lt.s32.totalorder %s473_s29, %s467_s27 }
  0x1b   : > { %256 = vmatprep.subr.bf16.mxu0 %v242_v7 }
  0x1c   : > { %257 = vmatpush1.bf16.msra.mxu0 %v239_v9  ;;  %p476_p3 = por %p475_p2, %p474_p1 }
  0x1d   : > { %258 = vmatprep.subr.bf16.mxu0 %v464_v8 }
  0x1e   : > { %p477_p5 = pnand %p476_p3, %p470_p0 }
  0x20   : > { %259 = vmatpush1.bf16.msra.mxu0 %v466_v10 }
  0x23   : > { %395 = vmatmul.mubr.msk.bf16.vlgmr.msra.gmra.mxu0 %vm230_vm2, %v201_v11 }
  0x91   : > { %v210_v12 = vpop.permute.xlu0 %209 }
  0xe3   : > { %v278_v13 = vpop.f32.mrf.mxu0 }
  0xe4   : > { %v279_v15 = vadd.f32 %v278_v13, %v210_v12 }
  0xe5   : > { %v280_v14 = vpop.f32.mrf.mxu0 }
  0xe6   : > { %v281_v16 = vadd.f32 %v280_v14, %v210_v12 }
  0xe7   : > { %v282_v17 = vpop.f32.mrf.mxu0 }
  0xe8   : > { %v287_v18 = vcombine.low %v279_v15, %v281_v16 }
  0xe9   : > { %v283_v19 = vpop.f32.mrf.mxu0 }
  0xea   : > { %289 = vst [vmem:[%s188_s11] sm:$0xff] %v287_v18 }
  0xeb   : > { %480 = shalt.err (!%p477_p5)
}
  0xec   : > { %s481_s30 = scalar_lea.hbm %s639_s23, 128  ;;  %s485_s6 = scalar_lea.hbm %s682_s3, 256 }
  0xed   : > { %p482_p6 = scmp.ne.s32.totalorder %s639_s23, %s481_s30  ;;  %p486_p10 = scmp.lt.s32.totalorder %s639_s23, %s682_s3 }
  0xee   : > { %p487_p11 = scmp.lt.s32.totalorder %s485_s6, %s481_s30 }
  0xef   : > { %p483_p7 = pnand %p482_p6, %p608_p4 }
  0xf0   : > { %p488_p12 = por %p487_p11, %p486_p10 }
  0xf1   : > { %p484_p9 = pneg %p483_p7 }
  0xf3   : > { %p489_p13 = pnand %p488_p12, %p484_p9 }
  0xf5   : > { %492 = shalt.err (!%p489_p13)
}
  0xf6   : > { %403 = dma.vmem_to_hbm [thread:$0]  (%p608_p4), %s308_s18, 128, %s639_s23, %s291_s26  }
  0xf7 PF: > { %p409_p0 = scmp.ge.s32.totalorder %s543_s17, 2  ;;  %s319_s9 = sand.u32 1, %s523_s12  }
  0xf8   : > { %s320_s10 = scalar_lea.sflag [#allocation3], %s319_s9 }
  0xf9   : > { %p406_p1 = pnand %p409_p0, %p615_p8 }
  0xfb   : > { %p407_p2 = pneg %p406_p1 }
  0xfd   : > { %518 = dma.done.wait (%p407_p2), %s320_s10, 128  }
  0xfe   : > { %520 = vsyncadd (%p407_p2), %s320_s10, 4294967168  ;;  %s16_s17 = sadd.s32 1, %s543_s17   ;;  %s685_s12 = smov %s527_s13 }
  0xff   : > { %p13_p3 = scmp.ge.s32.totalorder %s16_s17, 4   ;;  %s686_s13 = smov %s531_s14 }
 0x100   : > { %s687_s14 = smov %s621_s25  ;;  %s688_s15 = smov %s539_s16 }
 0x101   : > { %s689_s16 = smov %s691_s20  ;;  %15 = sbr.rel (!%p13_p3) target bundleno = 4 (0x4), region = 67 }
 0x106   :  { %325 = vsyncpa [#allocation3], 1 }
 0x107   :  { %327 = vsyncpa [#allocation3 + $0x1], 1 }

</bundles_post_ra>
